<compile_context>
chip_gen: v5e
topology: v5e:2x2
jax: 0.10.0
libtpu: 0.0.40
codegen_flags: <defaults>
</compile_context>

<pallas_src>
import functools

import jax
import jax.numpy as jnp
from jax.experimental import pallas as pl
from jax.experimental.pallas import tpu as pltpu


def _round_up(v, m):
    return (v + m - 1) // m * m


_VMEM_LIMIT_BYTES = 48 * 1024 * 1024       # below v7x physical (64 MiB), raises v5e/v6e scoped default
_RESIDENT_BUDGET_BYTES = 40 * 1024 * 1024  # threshold for keeping the fused weight resident in VMEM


def _finalize_store(fused, o_ref, *, num_experts, c_out, gate_span, c_out_pad):
    """Gate softmax + gate-weighted sum of expert blocks; lane-dense store."""
    # ---- gate softmax over the first `num_experts` lanes (f32) ----
    logits = fused[:, :gate_span]                      # 128-aligned slice
    lane = jax.lax.broadcasted_iota(jnp.int32, logits.shape, 1)
    logits = jnp.where(lane < num_experts, logits, jnp.finfo(jnp.float32).min)
    m = jnp.max(logits, axis=1, keepdims=True)
    p = jnp.exp(logits - m)
    inv = pl.reciprocal(jnp.sum(p, axis=1, keepdims=True), approx=True)
    gate = p * inv                                     # lanes >= num_experts are ~0

    # ---- weighted sum of the contiguous (unpadded) expert column blocks ----
    # Unaligned static lane slices run on the XLU once per batch tile (cheap).
    out = None
    for e in range(num_experts):                       # static unroll; E is small
        blk = fused[:, num_experts + e * c_out: num_experts + (e + 1) * c_out]
        term = gate[:, e:e + 1] * blk
        out = term if out is None else out + term
    pad = c_out_pad - c_out
    if pad > 0:                                        # pad to a lane-dense (unmasked) store
        out = jnp.concatenate(
            [out, jnp.zeros((out.shape[0], pad), jnp.float32)], axis=1)
    o_ref[...] = out.astype(o_ref.dtype)


def _moe_kernel_resident(bias_ref, x_ref, w_ref, o_ref, *, num_experts, c_out,
                         gate_span, c_out_pad):
    # Whole fused weight is resident in VMEM; one wide MXU matmul per batch tile.
    fused = jnp.dot(x_ref[...], w_ref[...], preferred_element_type=jnp.float32)
    fused = fused + bias_ref[...]                      # bias row, folded post-matmul (f32)
    _finalize_store(fused, o_ref, num_experts=num_experts, c_out=c_out,
                    gate_span=gate_span, c_out_pad=c_out_pad)


def _moe_kernel_ktiled(bias_ref, x_ref, w_ref, o_ref, acc_ref, *, num_experts,
                       c_out, gate_span, c_out_pad):
    # Weight streamed over the K (contraction) grid axis; f32 VMEM accumulator.
    k = pl.program_id(1)

    @pl.when(k == 0)
    def _init():
        acc_ref[...] = jnp.broadcast_to(bias_ref[...], acc_ref.shape)

    acc_ref[...] += jnp.dot(x_ref[...], w_ref[...],
                            preferred_element_type=jnp.float32)

    @pl.when(k == pl.num_programs(1) - 1)
    def _fin():
        # TODO(synk): for very large E*C add an expert-group grid axis and slice
        # acc_ref per block instead of materializing the whole row slab.
        _finalize_store(acc_ref[...], o_ref, num_experts=num_experts, c_out=c_out,
                        gate_span=gate_span, c_out_pad=c_out_pad)


def pack_moe_params(gate_w, gate_b, expert_w, expert_b, compute_dtype=jnp.bfloat16):
    """Pack gate + expert weights column-wise into ONE fused matrix (do this once
    at init time, not per forward call).  Column layout:
        [0 .. E)                   gate logits
        [E + e*C .. E + (e+1)*C)   expert e outputs
    Only the total column count is rounded up to a multiple of 128.
    """
    D, E = gate_w.shape
    _, _, C = expert_w.shape
    d_pad = _round_up(D, 128)
    n_cols = _round_up(E + E * C, 128)
    c_out_pad = _round_up(C, 128)

    w = jnp.zeros((d_pad, n_cols), jnp.float32)
    w = w.at[:D, :E].set(gate_w.astype(jnp.float32))
    w = w.at[:D, E:E + E * C].set(
        jnp.transpose(expert_w, (1, 0, 2)).reshape(D, E * C).astype(jnp.float32))
    w = w.astype(compute_dtype)

    bias = jnp.zeros((1, n_cols), jnp.float32)                     # kept f32
    bias = bias.at[0, :E].set(gate_b.astype(jnp.float32))
    bias = bias.at[0, E:E + E * C].set(expert_b.reshape(E * C).astype(jnp.float32))

    meta = dict(E=E, D=D, C=C, d_pad=d_pad, n_cols=n_cols,
                c_out_pad=c_out_pad, compute_dtype=compute_dtype)
    return w, bias, meta


def _pick_tk(d_pad, itemsize, n_cols):
    # Prefer fat K tiles (fewer acc read-modify-writes), bounded by the
    # double-buffered (tk, n_cols) weight tile footprint.
    for tk in (512, 256, 128):
        if d_pad % tk == 0 and 2 * tk * n_cols * itemsize <= 16 * 1024 * 1024:
            return tk
    return 128


def moe_forward(x, w_packed, bias_row, meta):
    """x: (B, D); w_packed/bias_row/meta from pack_moe_params."""
    B, D = x.shape
    E, C = meta["E"], meta["C"]
    d_pad, n_cols, c_out_pad = meta["d_pad"], meta["n_cols"], meta["c_out_pad"]
    cdtype = meta["compute_dtype"]
    gate_span = _round_up(E, 128)
    w_item = jnp.dtype(cdtype).itemsize
    o_item = jnp.dtype(x.dtype).itemsize

    # Batch tile: big tiles amortize weight streaming and per-step overhead.
    if B >= 512:
        tm = 512
    elif B >= 256:
        tm = 256
    elif B >= 128:
        tm = 128
    else:
        tm = _round_up(B, 8)
    # Bound the (tm, n_cols) f32 row slab (v7x has only 64 MiB VMEM / TC).
    while tm > 128 and tm * n_cols * 4 > 8 * 1024 * 1024:
        tm //= 2
    b_pad = _round_up(B, tm)

    x_pad = jnp.zeros((b_pad, d_pad), jnp.float32).at[:B, :D].set(
        x.astype(jnp.float32)).astype(cdtype)

    kwargs = dict(num_experts=E, c_out=C, gate_span=gate_span, c_out_pad=c_out_pad)

    resident_bytes = (2 * d_pad * n_cols * w_item      # fused weight (pipeline bufs)
                      + 2 * tm * d_pad * w_item        # double-buffered x tile
                      + 2 * tm * c_out_pad * o_item    # double-buffered out tile
                      + 2 * n_cols * 4                 # bias row
                      + tm * n_cols * 4)               # f32 row slab / temporaries

    if resident_bytes <= _RESIDENT_BUDGET_BYTES:
        # Path A: fused weight stays resident in VMEM.  Constant block index
        # => fetched from HBM once and reused across every batch tile.
        grid_spec = pltpu.PrefetchScalarGridSpec(
            num_scalar_prefetch=0,
            grid=(b_pad // tm,),
            in_specs=[
                pl.BlockSpec((1, n_cols), lambda i: (0, 0)),        # bias row (f32)
                pl.BlockSpec((tm, d_pad), lambda i: (i, 0)),        # x tile
                pl.BlockSpec((d_pad, n_cols), lambda i: (0, 0)),    # resident weight
            ],
            out_specs=pl.BlockSpec((tm, c_out_pad), lambda i: (i, 0)),
        )
        kernel = functools.partial(_moe_kernel_resident, **kwargs)
        dims = ("parallel",)
    else:
        # Path B: stream the fused weight over a K grid axis (reduction last).
        tk = _pick_tk(d_pad, w_item, n_cols)
        grid_spec = pltpu.PrefetchScalarGridSpec(
            num_scalar_prefetch=0,
            grid=(b_pad // tm, d_pad // tk),
            in_specs=[
                pl.BlockSpec((1, n_cols), lambda i, k: (0, 0)),     # bias row (f32)
                pl.BlockSpec((tm, tk), lambda i, k: (i, k)),        # x tile
                pl.BlockSpec((tk, n_cols), lambda i, k: (k, 0)),    # weight K tile
            ],
            out_specs=pl.BlockSpec((tm, c_out_pad), lambda i, k: (i, 0)),
            scratch_shapes=[pltpu.VMEM((tm, n_cols), jnp.float32)],
        )
        kernel = functools.partial(_moe_kernel_ktiled, **kwargs)
        dims = ("parallel", "arbitrary")

    out_pad = pl.pallas_call(
        kernel,
        out_shape=jax.ShapeDtypeStruct((b_pad, c_out_pad), x.dtype),
        grid_spec=grid_spec,
        compiler_params=pltpu.CompilerParams(
            dimension_semantics=dims,
            vmem_limit_bytes=_VMEM_LIMIT_BYTES),
    )(bias_row, x_pad, w_packed)

    return out_pad[:B, :C]


def init_params(key, num_experts, d_model, num_classes):
    """Deterministic init mimicking nn.Linear's U(-1/sqrt(in), 1/sqrt(in))."""
    k_gw, k_gb, k_ew, k_eb = jax.random.split(key, 4)
    bound = 1.0 / (d_model ** 0.5)
    gate_w = jax.random.uniform(k_gw, (d_model, num_experts), jnp.float32, -bound, bound)
    gate_b = jax.random.uniform(k_gb, (num_experts,), jnp.float32, -bound, bound)
    expert_w = jax.random.uniform(
        k_ew, (num_experts, d_model, num_classes), jnp.float32, -bound, bound)
    expert_b = jax.random.uniform(
        k_eb, (num_experts, num_classes), jnp.float32, -bound, bound)
    return gate_w, gate_b, expert_w, expert_b


def moe_reference(x, gate_w, gate_b, expert_w, expert_b):
    logits = x @ gate_w + gate_b                                    # (B, E)
    gate = jax.nn.softmax(logits, axis=1)                           # (B, E)
    expert_out = jnp.einsum("bd,edc->bec", x, expert_w) + expert_b  # (B, E, C)
    return jnp.sum(gate[:, :, None] * expert_out, axis=1)           # (B, C)


if __name__ == "__main__":
    num_experts, d_model, num_classes = 4, 32, 16
    batch = 8

    key = jax.random.PRNGKey(0)
    k_x, k_p = jax.random.split(key)
    x = jax.random.normal(k_x, (batch, d_model), jnp.float32)
    gate_w, gate_b, expert_w, expert_b = init_params(k_p, num_experts, d_model, num_classes)

    ref = moe_reference(x, gate_w, gate_b, expert_w, expert_b)

    # Default compute path: bf16 inputs / weights, f32 accumulation + softmax.
    w_bf, bias_bf, meta_bf = pack_moe_params(
        gate_w, gate_b, expert_w, expert_b, compute_dtype=jnp.bfloat16)
    out_bf = jax.block_until_ready(moe_forward(x, w_bf, bias_bf, meta_bf))
    assert out_bf.shape == (batch, num_classes)
    assert jnp.allclose(out_bf, ref, atol=5e-2, rtol=5e-2), "bf16 kernel mismatch vs reference"

    # f32 compute path (matches the PyTorch module; approx reciprocal -> ~1e-3 tol).
    w_f32, bias_f32, meta_f32 = pack_moe_params(
        gate_w, gate_b, expert_w, expert_b, compute_dtype=jnp.float32)
    out_f32 = jax.block_until_ready(moe_forward(x, w_f32, bias_f32, meta_f32))
    assert out_f32.shape == (batch, num_classes)
    assert jnp.allclose(out_f32, ref, atol=5e-3, rtol=5e-3), "f32 kernel mismatch vs reference"

    print("KERNEL_OK")
</pallas_src>

<mosaic_0001>
module attributes {stable_mosaic.version = 11 : i64} {
  func.func @_moe_kernel_resident(%arg0: i32, %arg1: memref<1x128xf32, #tpu.memory_space<vmem>>, %arg2: memref<8x128xbf16, #tpu.memory_space<vmem>>, %arg3: memref<128x128xbf16, #tpu.memory_space<vmem>>, %arg4: memref<8x128xf32, #tpu.memory_space<vmem>>) attributes {dimension_semantics = [#tpu.dimension_semantics<parallel>], iteration_bounds = array<i64: 1>, scalar_prefetch = 0 : i64, scratch_operands = 0 : i64, tpu.core_type = #tpu.core_type<tc>, window_params = [{pipeline_mode = #tpu.pipeline_mode<synchronous>, transform_indices = @transform_0, window_bounds = array<i64: 1, 128>}, {transform_indices = @transform_1, window_bounds = array<i64: 8, 128>}, {pipeline_mode = #tpu.pipeline_mode<synchronous>, transform_indices = @transform_2, window_bounds = array<i64: 128, 128>}, {transform_indices = @transform_3, window_bounds = array<i64: 8, 128>}]} {
    %c0 = arith.constant 0 : index
    %c0_0 = arith.constant 0 : index
    %0 = vector.load %arg2[%c0, %c0_0] : memref<8x128xbf16, #tpu.memory_space<vmem>>, vector<8x128xbf16>
    %c0_1 = arith.constant 0 : index
    %c0_2 = arith.constant 0 : index
    %1 = vector.load %arg3[%c0_1, %c0_2] : memref<128x128xbf16, #tpu.memory_space<vmem>>, vector<128x128xbf16>
    %cst = arith.constant dense<0.000000e+00> : vector<8x128xf32>
    %2 = tpu.matmul %0, %1, %cst {dimension_numbers = #tpu.dot_dimension_numbers<[1], [0], [0], [1], [0, 0, 1, 1], [], []>} : vector<8x128xbf16>, vector<128x128xbf16>, vector<8x128xf32> -> vector<8x128xf32>
    %c0_3 = arith.constant 0 : index
    %c0_4 = arith.constant 0 : index
    %3 = vector.load %arg1[%c0_3, %c0_4] : memref<1x128xf32, #tpu.memory_space<vmem>>, vector<1x128xf32>
    %4 = vector.broadcast %3 : vector<1x128xf32> to vector<8x128xf32>
    %5 = arith.addf %2, %4 : vector<8x128xf32>
    %6 = tpu.iota {dimensions = array<i32: 1>} : vector<8x128xi32>
    %c4_i32 = arith.constant 4 : i32
    %7 = vector.broadcast %c4_i32 : i32 to vector<8x128xi32>
    %8 = arith.cmpi slt, %6, %7 : vector<8x128xi32>
    %cst_5 = arith.constant -3.40282347E+38 : f32
    %9 = vector.broadcast %cst_5 : f32 to vector<8x128xf32>
    %10 = arith.select %8, %5, %9 : vector<8x128xi1>, vector<8x128xf32>
    %cst_6 = arith.constant dense<0xFF800000> : vector<8xf32>
    %11 = vector.multi_reduction <maximumf>, %10, %cst_6 [1] : vector<8x128xf32> to vector<8xf32>
    %12 = vector.shape_cast %11 : vector<8xf32> to vector<8x1xf32>
    %13 = vector.broadcast %12 : vector<8x1xf32> to vector<8x128xf32>
    %14 = arith.subf %10, %13 : vector<8x128xf32>
    %15 = math.exp %14 : vector<8x128xf32>
    %cst_7 = arith.constant dense<0.000000e+00> : vector<8xf32>
    %16 = vector.multi_reduction <add>, %15, %cst_7 [1] : vector<8x128xf32> to vector<8xf32>
    %17 = vector.shape_cast %16 : vector<8xf32> to vector<8x1xf32>
    %18 = tpu.reciprocal %17 {approx = true} : vector<8x1xf32> -> vector<8x1xf32>
    %19 = vector.broadcast %18 : vector<8x1xf32> to vector<8x128xf32>
    %20 = arith.mulf %15, %19 : vector<8x128xf32>
    %21 = vector.extract_strided_slice %5 {offsets = [0, 4], sizes = [8, 16], strides = [1, 1]} : vector<8x128xf32> to vector<8x16xf32>
    %22 = vector.extract_strided_slice %20 {offsets = [0, 0], sizes = [8, 1], strides = [1, 1]} : vector<8x128xf32> to vector<8x1xf32>
    %23 = vector.broadcast %22 : vector<8x1xf32> to vector<8x16xf32>
    %24 = arith.mulf %23, %21 : vector<8x16xf32>
    %25 = vector.extract_strided_slice %5 {offsets = [0, 20], sizes = [8, 16], strides = [1, 1]} : vector<8x128xf32> to vector<8x16xf32>
    %26 = vector.extract_strided_slice %20 {offsets = [0, 1], sizes = [8, 1], strides = [1, 1]} : vector<8x128xf32> to vector<8x1xf32>
    %27 = vector.broadcast %26 : vector<8x1xf32> to vector<8x16xf32>
    %28 = arith.mulf %27, %25 : vector<8x16xf32>
    %29 = arith.addf %24, %28 : vector<8x16xf32>
    %30 = vector.extract_strided_slice %5 {offsets = [0, 36], sizes = [8, 16], strides = [1, 1]} : vector<8x128xf32> to vector<8x16xf32>
    %31 = vector.extract_strided_slice %20 {offsets = [0, 2], sizes = [8, 1], strides = [1, 1]} : vector<8x128xf32> to vector<8x1xf32>
    %32 = vector.broadcast %31 : vector<8x1xf32> to vector<8x16xf32>
    %33 = arith.mulf %32, %30 : vector<8x16xf32>
    %34 = arith.addf %29, %33 : vector<8x16xf32>
    %35 = vector.extract_strided_slice %5 {offsets = [0, 52], sizes = [8, 16], strides = [1, 1]} : vector<8x128xf32> to vector<8x16xf32>
    %36 = vector.extract_strided_slice %20 {offsets = [0, 3], sizes = [8, 1], strides = [1, 1]} : vector<8x128xf32> to vector<8x1xf32>
    %37 = vector.broadcast %36 : vector<8x1xf32> to vector<8x16xf32>
    %38 = arith.mulf %37, %35 : vector<8x16xf32>
    %39 = arith.addf %34, %38 : vector<8x16xf32>
    %cst_8 = arith.constant 0.000000e+00 : f32
    %40 = vector.broadcast %cst_8 : f32 to vector<8x112xf32>
    %41 = tpu.concatenate %39, %40 in 1 : vector<8x16xf32>, vector<8x112xf32> -> vector<8x128xf32>
    %c0_9 = arith.constant 0 : index
    %c0_10 = arith.constant 0 : index
    %42 = vector.load %arg4[%c0_9, %c0_10] : memref<8x128xf32, #tpu.memory_space<vmem>>, vector<8x128xf32>
    tpu.vector_store %arg4[%c0_9, %c0_10], %41 {strides = array<i32>} : memref<8x128xf32, #tpu.memory_space<vmem>>, vector<8x128xf32>,
    return
  }
  func.func @transform_0(%arg0: i32) -> (i32, i32) {
    %c0_i32 = arith.constant 0 : i32
    %c0_i32_0 = arith.constant 0 : i32
    %c0_i32_1 = arith.constant 0 : i32
    return %c0_i32, %c0_i32_0 : i32, i32
  }
  func.func @transform_1(%arg0: i32) -> (i32, i32) {
    %c0_i32 = arith.constant 0 : i32
    %c0_i32_0 = arith.constant 0 : i32
    return %arg0, %c0_i32 : i32, i32
  }
  func.func @transform_2(%arg0: i32) -> (i32, i32) {
    %c0_i32 = arith.constant 0 : i32
    %c0_i32_0 = arith.constant 0 : i32
    %c0_i32_1 = arith.constant 0 : i32
    return %c0_i32, %c0_i32_0 : i32, i32
  }
  func.func @transform_3(%arg0: i32) -> (i32, i32) {
    %c0_i32 = arith.constant 0 : i32
    %c0_i32_0 = arith.constant 0 : i32
    return %arg0, %c0_i32 : i32, i32
  }
}

</mosaic_0001>

<bundles_post_ra>
// kernel: tpu_custom_call.1
= control target key start
LH: loop header
LB: loop body
LE: loop exit
PB: predicated region body
PF: predicated region fallthrough
CT: control target
= control target key end

     0   :  { %8 = vsyncpa [#allocation3], 0  ;;  %s426_s0 = inlined_call_operand.hbm [shape: f32[1,128], index: 0, kind: input, shape index: {}]   ;;  %s427_s1 = inlined_call_operand.hbm [shape: bf16[8,128], index: 1, kind: input, shape index: {}]   ;;  %s428_s2 = inlined_call_operand.hbm [shape: bf16[128,128], index: 2, kind: input, shape index: {}]   ;;  %s429_s3 = inlined_call_operand.hbm [shape: f32[8,128], index: 3, kind: output, shape index: {}]  }
   0x1   :  { %9 = vsyncpa [#allocation6], 0  ;;  %s27_s14 = sshll.u32 %s427_s1, 4  ;;  %s28_s14 = int_to_ptr.hbm [resolvable:$true] %s27_s14 }
   0x2   :  { %10 = vsyncpa [#allocation4], 0  ;;  %s380_s15 = smov [#allocation5]   ;;  %s16_s19 = sshll.u32 %s426_s0, 4  ;;  %s17_s19 = int_to_ptr.hbm [resolvable:$true] %s16_s19 }
   0x3   :  { %s29_s16 = sshll.u32 %s380_s15, 4  ;;  %s381_s20 = smov [#allocation2]   ;;  %s30_s16 = int_to_ptr.vmem [resolvable:$true] %s29_s16 }
   0x4   :  { %32 = dma.hbm_to_vmem [thread:$0]  %s28_s14, 64, %s30_s16, [#allocation6]  }
   0x5   :  { %s18_s21 = sshll.u32 %s381_s20, 4  ;;  %s37_s24 = sshll.u32 %s428_s2, 4  ;;  %s19_s21 = int_to_ptr.vmem [resolvable:$true] %s18_s21  ;;  %s38_s24 = int_to_ptr.hbm [resolvable:$true] %s37_s24 }
   0x6   :  { %21 = dma.hbm_to_vmem [thread:$0]  %s17_s19, 16, %s19_s21, [#allocation3]  }
   0x7   :  { %s382_s1 = smov [#allocation7]   ;;  %s383_s26 = smov 64  }
   0x8   :  { %s39_s25 = sshll.u32 %s382_s1, 4  ;;  %s384_s27 = smov 4   ;;  %s40_s25 = int_to_ptr.vmem [resolvable:$true] %s39_s25 }
   0x9   :  { %45 = dma.hbm_to_vmem [thread:$0]  %s38_s24, 1024, %s40_s25, [#allocation6], %s383_s26, %s383_s26, %s384_s27  }
   0xa   :  { %374 = dma.done.wait [#allocation3], 16  }
   0xb   :  { %375 = vsyncadd [#allocation3], 4294967280 }
   0xc   :  { %376 = dma.done.wait [#allocation6], 1088  }
   0xd   :  { %377 = vsyncadd [#allocation6], 4294966208  ;;  %v253_v0 = vld [vmem:[#allocation7 + $0x38] sm:$0xff]  ;;  %v252_v1 = vld [vmem:[#allocation7 + $0x30] sm:$0xff]  ;;  %v140_v9 = vlaneseq  ;;  %v385_v20 = vmov 3   ;;  %v386_v21 = vmov 1  }
   0xe   :  { %127 = vmatpush.bf16.msra.mxu0 %v253_v0  ;;  %v251_v2 = vld [vmem:[#allocation7 + $0x28] sm:$0xff]  ;;  %v250_v3 = vld [vmem:[#allocation7 + $0x20] sm:$0xff]  ;;  %v249_v4 = vld [vmem:[#allocation7 + $0x18] sm:$0xff]  ;;  %270 = vset.pattern.permute.xlu2 %v385_v20  ;;  %v387_v25 = vmov 0   ;;  %v388_v26 = vmov 2   ;;  %s389_s0 = smov 80  }
   0xf   :  { %v248_v5 = vld [vmem:[#allocation7 + $0x10] sm:$0xff]  ;;  %v247_v6 = vld [vmem:[#allocation7 + $0x8] sm:$0xff]  ;;  %v246_v7 = vld [vmem:[#allocation7] sm:$0xff]  ;;  %v141_v10 = vand.u32 127, %v140_v9  ;;  %268 = vset.pattern.permute.xlu1 %v386_v21  ;;  %272 = vset.pattern.permute.xlu0 %v385_v20  ;;  %s390_s2 = smov 112   ;;  %s391_s28 = smov 96  }
  0x10   :  { %v58_v8 = vld [vmem:[#allocation5] sm:$0xf]  ;;  %v273_v11 = vld [vmem:[#allocation2] ss:$0 sm:$0xff]  ;;  %s392_s29 = smov 124   ;;  %s393_s30 = smov [#allocation8]  }
  0x11   :  { %vm142_vm0 = vcmp.lt.s32.totalorder %v141_v10, 4  ;;  %s201_s4 = sshll.u32 %s393_s30, 4  ;;  %s203_s7 = sshll.u32 %s429_s3, 4  ;;  %vm193_vm1 = vcmask 130048   ;;  %s202_s4 = int_to_ptr.vmem [resolvable:$true] %s201_s4  ;;  %s204_s7 = int_to_ptr.hbm [resolvable:$true] %s203_s7 }
  0x12   :  { %128 = vmatpush.bf16.msra.mxu0 %v252_v1 }
  0x16   :  { %129 = vmatpush.bf16.msra.mxu0 %v251_v2 }
  0x1a   :  { %130 = vmatpush.bf16.msra.mxu0 %v250_v3 }
  0x1e   :  { %131 = vmatpush.bf16.msra.mxu0 %v249_v4 }
  0x22   :  { %132 = vmatpush.bf16.msra.mxu0 %v248_v5 }
  0x26   :  { %133 = vmatpush.bf16.msra.mxu0 %v247_v6 }
  0x2a   :  { %134 = vmatpush.bf16.msra.mxu0 %v246_v7 }
  0x2d   :  { %135 = vmatmul.bf16.vlgmr.msra.gmra.mxu0 %v58_v8 }
  0xaa   :  { %v136_v12 = vpop.f32.mrf.mxu0 }
  0xab   :  { %v137_v13 = vadd.f32 %v273_v11, %v136_v12 }
  0xad   :  { %v143_v14 = vsel %vm142_vm0, %v137_v13, -3.4028235e+38 }
  0xae   :  { %144 = vmax.xlane.f32.xlu0 %v143_v14 }
  0xb2   :  { %v138_v15 = vpop.f32.mrf.mxu0 }
 0x121   :  { %v145_v16 = vpop.xlane.xlu0 %144 }
 0x122   :  { %v146_v17 = vsub.f32 %v143_v14, %v145_v16 }
 0x124   :  { %v147_v18 = vmul.f32 1.442695, %v146_v17 }
 0x126   :  { %274 = vpow2.f32 %v147_v18 }
 0x12c   :  { %v275_v19 = vpop.eup %274 }
 0x12d   :  { %149 = vadd.xlane.f32.xlu0 %v275_v19 }
 0x1a0   :  { %v150_v22 = vpop.xlane.xlu0 %149 }
 0x1a1   :  { %276 = vrcp.f32 %v150_v22 }
 0x1a7   :  { %v277_v23 = vpop.eup %276 }
 0x1a8   :  { %v152_v24 = vmul.f32 %v277_v23, %v275_v19 }
 0x1aa   :  { %180 = vperm.xlu2 %270, %v152_v24   ;;  %160 = vperm.xlu1 %268, %v152_v24  }
 0x1b2   :  { %271 = vset.pattern.permute.xlu2 %v387_v25  ;;  %269 = vset.pattern.permute.xlu1 %v388_v26 }
 0x1b3   :  { %155 = vperm.xlu2 %271, %v152_v24   ;;  %170 = vperm.xlu1 %269, %v152_v24  }
 0x204   :  { %v181_v27 = vpop.permute.xlu2 %180 }
 0x205   :  { %v183_v28 = vmul.f32 %v181_v27, %v137_v13 }
 0x207   :  { %185 = vrot.lane.b32.xlu2 %v183_v28, %s389_s0 }
 0x20d   :  { %v156_v33 = vpop.permute.xlu2 %155 }
 0x20e   :  { %v158_v35 = vmul.f32 %v156_v33, %v137_v13 }
 0x21c   :  { %v161_v29 = vpop.permute.xlu1 %160 }
 0x21d   :  { %v163_v30 = vmul.f32 %v161_v29, %v137_v13 }
 0x21f   :  { %165 = vrot.lane.b32.xlu0 %v163_v30, %s390_s2 }
 0x225   :  { %v171_v31 = vpop.permute.xlu1 %170 }
 0x226   :  { %v173_v32 = vmul.f32 %v171_v31, %v137_v13 }
 0x228   :  { %175 = vrot.lane.b32.xlu1 %v173_v32, %s391_s28 }
 0x261   :  { %v186_v39 = vpop.permute.xlu2 %185 }
 0x291   :  { %v166_v34 = vpop.permute.xlu0 %165 }
 0x292   :  { %v168_v36 = vadd.f32 %v166_v34, %v158_v35 }
 0x29a   :  { %v176_v37 = vpop.permute.xlu1 %175 }
 0x29b   :  { %v178_v38 = vadd.f32 %v176_v37, %v168_v36 }
 0x29d   :  { %v188_v40 = vadd.f32 %v186_v39, %v178_v38 }
 0x29f   :  { %190 = vrot.lane.b32.xlu1 %v188_v40, %s392_s29 }
 0x311   :  { %v191_v41 = vpop.permute.xlu1 %190 }
 0x312   :  { %v194_v42 = vsel %vm193_vm1, %v191_v41, 0.0 }
 0x313   :  { %195 = vst [vmem:[#allocation8] sm:$0xff] %v194_v42 }
 0x314   :  { %206 = dma.vmem_to_hbm [thread:$0]  %s202_s4, 128, %s204_s7, [#allocation4]  }
 0x315   :  { %378 = dma.done.wait [#allocation4], 128  }
 0x316   :  { %379 = vsyncadd [#allocation4], 4294967168 }
 0x317   :  { %211 = vsyncpa [#allocation3], 1 }
 0x318   :  { %212 = vsyncpa [#allocation6], 1 }
 0x319   :  { %213 = vsyncpa [#allocation4], 1 }

</bundles_post_ra>
